<compile_context>
chip_gen: v5e
topology: v5e:2x2
jax: 0.10.0
libtpu: 0.0.40
codegen_flags: <defaults>
</compile_context>

<pallas_src>
import math

import jax
import jax.numpy as jnp
from jax.experimental import pallas as pl
from jax.experimental.pallas import tpu as pltpu


_TARGET_BLOCK_BYTES = 4 << 20   # ~4 MiB per x/out block
_VMEM_LIMIT_BYTES = 32 << 20    # explicit scoped-VMEM: safe on v5e/v6e/v7x


def make_positional_encoding_table(d_model: int, max_len: int = 512) -> jnp.ndarray:
    """Deterministic sinusoidal table, identical to the PyTorch __init__ (odd D safe)."""
    position = jnp.arange(0, max_len, dtype=jnp.float32)[:, None]             # (max_len, 1)
    div_term = jnp.exp(
        jnp.arange(0, d_model, 2, dtype=jnp.float32) * -(math.log(10000.0) / d_model)
    )                                                                          # (ceil(D/2),)
    angles = position * div_term                                               # (max_len, ceil(D/2))
    pe = jnp.zeros((max_len, d_model), dtype=jnp.float32)
    pe = pe.at[:, 0::2].set(jnp.sin(angles))
    pe = pe.at[:, 1::2].set(jnp.cos(angles)[:, : d_model // 2])                # odd-D guard
    return pe                                                                  # (max_len, d_model)


def _pe_add_batch_kernel(x_ref, pe_ref, o_ref):
    # Path A. x_ref/o_ref: (B, tS, D) whole-batch tile; pe_ref: (tS, D).
    # Pure VPU elementwise add; pe broadcasts over the batch axis.
    o_ref[...] = (x_ref[...] + pe_ref[...][None, :, :]).astype(o_ref.dtype)


def _pe_add_kernel(x_ref, pe_ref, o_ref):
    # Path B. x_ref/o_ref: (1, tS, D) per-batch tile; pe_ref: (tS, D).
    o_ref[...] = (x_ref[...] + pe_ref[...]).astype(o_ref.dtype)


def _sublane_rows(itemsize: int) -> int:
    """Row granularity for the second-to-last dim: 8 (f32), 16 (bf16/f16), 32 (i8/fp8)."""
    return 8 * max(1, 4 // max(1, itemsize))


def _choose_seq_tile(seq: int, bytes_per_row: int, row_mult: int,
                     target_bytes: int = _TARGET_BLOCK_BYTES) -> int:
    """Pick a sequence-tile size: ~target_bytes per x block, multiple of row_mult rows."""
    if seq <= row_mult:
        return seq
    target_rows = max(row_mult, target_bytes // max(1, bytes_per_row))
    if target_rows >= seq:
        return seq
    # Prefer an exact multiple-of-row_mult divisor of seq (no ragged edge block).
    t = (target_rows // row_mult) * row_mult
    while t >= row_mult:
        if seq % t == 0:
            return t
        t -= row_mult
    # Fall back to a ragged last block (Pallas masks the out-of-bounds rows).
    return max(row_mult, (target_rows // row_mult) * row_mult)


def _pe_add_tiled(x: jnp.ndarray, pe: jnp.ndarray) -> jnp.ndarray:
    """x: (B, S, D); pe: (S, D) with the same dtype. Returns x + pe[None]."""
    B, S, D = x.shape
    itemsize = jnp.dtype(x.dtype).itemsize
    row_mult = _sublane_rows(itemsize)

    # Real DMA pattern after the grid fix: x read + out write + pe read once.
    cost = pl.CostEstimate(
        flops=B * S * D,                                   # VPU adds; MXU idle
        transcendentals=0,
        bytes_accessed=(2 * B * S * D + S * D) * itemsize,
    )

    # ---- Path A: whole batch per block, 1-D grid over sequence tiles. -------
    # pe streamed exactly once per seq tile; grid-step count independent of B.
    if B * row_mult * D * itemsize <= _TARGET_BLOCK_BYTES:
        tS = _choose_seq_tile(S, B * D * itemsize, row_mult)
        return pl.pallas_call(
            _pe_add_batch_kernel,
            out_shape=jax.ShapeDtypeStruct((B, S, D), x.dtype),
            grid_spec=pltpu.PrefetchScalarGridSpec(
                num_scalar_prefetch=0,
                grid=(pl.cdiv(S, tS),),
                in_specs=[
                    pl.BlockSpec((B, tS, D), lambda s: (0, s, 0)),
                    pl.BlockSpec((tS, D), lambda s: (s, 0)),
                ],
                out_specs=pl.BlockSpec((B, tS, D), lambda s: (0, s, 0)),
            ),
            compiler_params=pltpu.CompilerParams(
                # The (possibly long) sequence-tile axis is the parallel axis
                # the v7x megacore can split evenly; v5e/v6e: no-op.
                dimension_semantics=("parallel",),
                vmem_limit_bytes=_VMEM_LIMIT_BYTES,
            ),
            cost_estimate=cost,
        )(x, pe)

    # ---- Path B: very large batch -> one batch element per block. -----------
    # Batch is the innermost grid axis so the pe block index is constant across
    # consecutive steps and its DMA is skipped (no B-fold pe re-fetch).
    tS = _choose_seq_tile(S, D * itemsize, row_mult)
    return pl.pallas_call(
        _pe_add_kernel,
        out_shape=jax.ShapeDtypeStruct((B, S, D), x.dtype),
        grid_spec=pltpu.PrefetchScalarGridSpec(
            num_scalar_prefetch=0,
            grid=(pl.cdiv(S, tS), B),
            in_specs=[
                pl.BlockSpec((1, tS, D), lambda s, b: (b, s, 0)),
                pl.BlockSpec((tS, D), lambda s, b: (s, 0)),
            ],
            out_specs=pl.BlockSpec((1, tS, D), lambda s, b: (b, s, 0)),
        ),
        compiler_params=pltpu.CompilerParams(
            dimension_semantics=("parallel", "parallel"),
            vmem_limit_bytes=_VMEM_LIMIT_BYTES,
        ),
        cost_estimate=cost,
    )(x, pe)


def positional_encoding_forward(x: jnp.ndarray, pe_table: jnp.ndarray) -> jnp.ndarray:
    """x: (B, S, D); pe_table: (max_len, D). Returns x + pe_table[None, :S, :]."""
    B, S, D = x.shape
    assert S <= pe_table.shape[0], "sequence length exceeds max_len"
    assert D == pe_table.shape[1], "d_model mismatch"

    # Match pe dtype to the activations (halves pe traffic for bf16 and avoids
    # an implicit f32 promote + downcast in the kernel).
    pe_slice = pe_table[:S, :].astype(x.dtype)

    # Lane-density: if d_model is not a multiple of 128, fold `g` consecutive
    # sequence positions into the feature axis so the kernel's last dim is a
    # multiple of 128 (unmasked, lane-dense vst). Pure contiguous reshape; pe
    # folds identically, so the broadcasted add is unchanged.
    fold = 1
    if D % 128 != 0:
        g = 128 // math.gcd(D, 128)
        if S % g == 0:
            fold = g

    if fold > 1:
        out = _pe_add_tiled(
            x.reshape(B, S // fold, fold * D),
            pe_slice.reshape(S // fold, fold * D),
        )
        return out.reshape(B, S, D)
    return _pe_add_tiled(x, pe_slice)

    # TODO(synk): bigger win than anything in-kernel is fusing this add into the
    # producer (embedding lookup) so x is only read/written once end-to-end.


if __name__ == "__main__":
    # Small shapes consistent with the module's forward: (batch, seq, d_model)
    batch, seq, d_model, max_len = 2, 8, 32, 512

    key = jax.random.PRNGKey(0)
    x = jax.random.normal(key, (batch, seq, d_model), dtype=jnp.float32)

    pe_table = make_positional_encoding_table(d_model, max_len)

    # Reference (same math as the PyTorch module).
    ref = x + pe_table[None, :seq, :]

    out = positional_encoding_forward(x, pe_table)
    out = jax.block_until_ready(out)

    assert out.shape == (batch, seq, d_model)
    assert jnp.allclose(out, ref, atol=1e-6), "mismatch vs reference"

    print("KERNEL_OK")
</pallas_src>

<mosaic_0001>
module attributes {stable_mosaic.version = 11 : i64} {
  func.func @_pe_add_batch_kernel(%arg0: i32, %arg1: memref<2x2x128xf32, #tpu.memory_space<vmem>>, %arg2: memref<2x128xf32, #tpu.memory_space<vmem>>, %arg3: memref<2x2x128xf32, #tpu.memory_space<vmem>>) attributes {dimension_semantics = [#tpu.dimension_semantics<parallel>], iteration_bounds = array<i64: 1>, scalar_prefetch = 0 : i64, scratch_operands = 0 : i64, tpu.core_type = #tpu.core_type<tc>, window_params = [{transform_indices = @transform_0, window_bounds = array<i64: 2, 2, 128>}, {transform_indices = @transform_1, window_bounds = array<i64: 2, 128>}, {transform_indices = @transform_2, window_bounds = array<i64: 2, 2, 128>}]} {
    %c0 = arith.constant 0 : index
    %c0_0 = arith.constant 0 : index
    %c0_1 = arith.constant 0 : index
    %0 = vector.load %arg1[%c0, %c0_0, %c0_1] : memref<2x2x128xf32, #tpu.memory_space<vmem>>, vector<2x2x128xf32>
    %c0_2 = arith.constant 0 : index
    %c0_3 = arith.constant 0 : index
    %1 = vector.load %arg2[%c0_2, %c0_3] : memref<2x128xf32, #tpu.memory_space<vmem>>, vector<2x128xf32>
    %2 = vector.shape_cast %1 : vector<2x128xf32> to vector<1x2x128xf32>
    %3 = vector.broadcast %2 : vector<1x2x128xf32> to vector<2x2x128xf32>
    %4 = arith.addf %0, %3 : vector<2x2x128xf32>
    %c0_4 = arith.constant 0 : index
    %c0_5 = arith.constant 0 : index
    %c0_6 = arith.constant 0 : index
    %5 = vector.load %arg3[%c0_4, %c0_5, %c0_6] : memref<2x2x128xf32, #tpu.memory_space<vmem>>, vector<2x2x128xf32>
    tpu.vector_store %arg3[%c0_4, %c0_5, %c0_6], %4 {strides = array<i32>} : memref<2x2x128xf32, #tpu.memory_space<vmem>>, vector<2x2x128xf32>,
    return
  }
  func.func @transform_0(%arg0: i32) -> (i32, i32, i32) {
    %c0_i32 = arith.constant 0 : i32
    %c0_i32_0 = arith.constant 0 : i32
    %c0_i32_1 = arith.constant 0 : i32
    return %c0_i32, %arg0, %c0_i32_0 : i32, i32, i32
  }
  func.func @transform_1(%arg0: i32) -> (i32, i32) {
    %c0_i32 = arith.constant 0 : i32
    %c0_i32_0 = arith.constant 0 : i32
    return %arg0, %c0_i32 : i32, i32
  }
  func.func @transform_2(%arg0: i32) -> (i32, i32, i32) {
    %c0_i32 = arith.constant 0 : i32
    %c0_i32_0 = arith.constant 0 : i32
    %c0_i32_1 = arith.constant 0 : i32
    return %c0_i32, %arg0, %c0_i32_0 : i32, i32, i32
  }
}

</mosaic_0001>

<bundles_post_ra>
// kernel: tpu_custom_call.1
= control target key start
LH: loop header
LB: loop body
LE: loop exit
PB: predicated region body
PF: predicated region fallthrough
CT: control target
= control target key end

     0   :  { %7 = vsyncpa [#allocation3], 0  ;;  %s181_s0 = inlined_call_operand.hbm [shape: f32[2,2,128], index: 0, kind: input, shape index: {}]   ;;  %s182_s1 = inlined_call_operand.hbm [shape: f32[2,128], index: 1, kind: input, shape index: {}]   ;;  %s183_s2 = inlined_call_operand.hbm [shape: f32[2,2,128], index: 2, kind: output, shape index: {}]  }
   0x1   :  { %8 = vsyncpa [#allocation6], 0 }
   0x2   :  { %9 = vsyncpa [#allocation4], 0  ;;  %s14_s11 = sshll.u32 %s181_s0, 4  ;;  %s152_s12 = smov [#allocation2]   ;;  %s15_s11 = int_to_ptr.hbm [resolvable:$true] %s14_s11 }
   0x3   :  { %s16_s13 = sshll.u32 %s152_s12, 4  ;;  %s28_s16 = sshll.u32 %s182_s1, 4  ;;  %s17_s13 = int_to_ptr.vmem [resolvable:$true] %s16_s13  ;;  %s29_s16 = int_to_ptr.hbm [resolvable:$true] %s28_s16 }
   0x4   :  { %s153_s17 = smov 32   ;;  %s154_s18 = smov 2  }
   0x5   :  { %22 = dma.hbm_to_vmem [thread:$0]  %s15_s11, 64, %s17_s13, [#allocation3], %s153_s17, %s153_s17, %s154_s18  }
   0x6   :  { %s155_s19 = smov [#allocation5]  }
   0x7   :  { %s30_s20 = sshll.u32 %s155_s19, 4  ;;  %s31_s20 = int_to_ptr.vmem [resolvable:$true] %s30_s20 }
   0x8   :  { %33 = dma.hbm_to_vmem [thread:$0]  %s29_s16, 32, %s31_s20, [#allocation6]  }
   0x9   :  { %146 = dma.done.wait [#allocation3], 64  }
   0xa   :  { %147 = vsyncadd [#allocation3], 4294967232 }
   0xb   :  { %148 = dma.done.wait [#allocation6], 32  }
   0xc   :  { %149 = vsyncadd [#allocation6], 4294967264  ;;  %s156_s0 = smov [#allocation7]   ;;  %s55_s24 = sshll.u32 %s183_s2, 4  ;;  %v42_v0 = vld [vmem:[#allocation2] sm:$0x3]  ;;  %s56_s24 = int_to_ptr.hbm [resolvable:$true] %s55_s24 }
   0xd   :  { %s53_s21 = sshll.u32 %s156_s0, 4  ;;  %v44_v1 = vld [vmem:[#allocation5] sm:$0x3]  ;;  %v43_v2 = vld [vmem:[#allocation2 + $0x2] sm:$0x3]  ;;  %s54_s21 = int_to_ptr.vmem [resolvable:$true] %s53_s21 }
   0xe   :  { %v45_v3 = vadd.f32 %v44_v1, %v42_v0  ;;  %v46_v4 = vadd.f32 %v44_v1, %v43_v2 }
  0x10   :  { %47 = vst [vmem:[#allocation7] sm:$0x3] %v45_v3 }
  0x11   :  { %48 = vst [vmem:[#allocation7 + $0x2] sm:$0x3] %v46_v4 }
  0x12   :  { %61 = dma.vmem_to_hbm [thread:$0]  %s54_s21, 64, %s56_s24, [#allocation4], %s153_s17, %s153_s17, %s154_s18  }
  0x13   :  { %150 = dma.done.wait [#allocation4], 64  }
  0x14   :  { %151 = vsyncadd [#allocation4], 4294967232 }
  0x15   :  { %66 = vsyncpa [#allocation3], 1 }
  0x16   :  { %67 = vsyncpa [#allocation6], 1 }
  0x17   :  { %68 = vsyncpa [#allocation4], 1 }

</bundles_post_ra>
